<compile_context>
chip_gen: v5e
topology: v5e:2x2
jax: 0.10.0
libtpu: 0.0.40
codegen_flags: <defaults>
</compile_context>

<pallas_src>
import jax
import jax.numpy as jnp
from jax.experimental import pallas as pl
from jax.experimental.pallas import tpu as pltpu

_EPS = 1e-12  # matches torch F.normalize default eps

_VMEM_LIMIT_BYTES = 48 * 1024 * 1024     # safe on v5e/v6e (128 MiB) and v7x (64 MiB)
_BUFFER_BUDGET_BYTES = 24 * 1024 * 1024  # pipeline buffers + kernel temporaries


def _group_op_kernel(f_ref, a_ref, o_ref):
    # Blocks: f/a = (TILE_N, C, TILE_R, 128) or (TILE_N, C, TILE_S);
    #         o   = same shape with the C axis reduced to 1.
    f = f_ref[...]
    a = a_ref[...]
    # Products in the input dtype (bf16 VALU exists on v6e/v7x), accumulation
    # in f32; the normalized tensors fn/an are never materialized.
    # TODO(synk): for very large C, chunk the reduction over C with f32
    # accumulators to bound the f32 product temporaries.
    dot = jnp.sum((f * a).astype(jnp.float32), axis=1, keepdims=True)
    nf2 = jnp.sum((f * f).astype(jnp.float32), axis=1, keepdims=True)
    na2 = jnp.sum((a * a).astype(jnp.float32), axis=1, keepdims=True)
    # clamp_min(eps) applied per-norm, exactly like torch F.normalize.
    denom = jnp.maximum(jnp.sqrt(nf2), _EPS) * jnp.maximum(jnp.sqrt(na2), _EPS)
    o_ref[...] = jnp.maximum(dot / denom, 0.0).astype(o_ref.dtype)


def _per_block_budget(C, itemsize):
    """Max bytes for ONE input block so that
       2 inputs x 2 pipeline buffers x B + ~3 f32 product temporaries of the
       same block fit inside _BUFFER_BUDGET_BYTES."""
    denom = 4 + (3 * 4) // itemsize
    return max(_BUFFER_BUDGET_BYTES // denom, C * 128 * itemsize)


def _ensure_two_grid_steps(tile_n, tile_sp, N, n_sp, sp_align):
    """v7x megacore: make sure the grid has >= 2 steps when the shape allows."""
    if pl.cdiv(N, tile_n) * pl.cdiv(n_sp, tile_sp) > 1:
        return tile_n, tile_sp
    if N > 1:
        return (N + 1) // 2, tile_sp
    if n_sp >= 2 * sp_align:
        half = -(-((n_sp + 1) // 2) // sp_align) * sp_align
        if half < n_sp:
            return tile_n, half
    return tile_n, tile_sp


def group_op(feature, anchor, mask=None, boxes=None):
    """feature, anchor: (N, C, H, W) -> (N, 1, H, W). mask/boxes unused (as in module)."""
    assert feature.shape == anchor.shape
    N, C, H, W = feature.shape
    S = H * W
    dtype = feature.dtype
    itemsize = jnp.dtype(dtype).itemsize
    block_budget = _per_block_budget(C, itemsize)

    if S % 128 == 0:
        # ---- 4-D lane-dense path: spatial -> (R, 128) -----------------------
        R = S // 128
        f = feature.reshape(N, C, R, 128)
        a = anchor.reshape(N, C, R, 128)
        row_bytes = C * 128 * itemsize
        max_rows = max(8, block_budget // row_bytes)
        tile_r = R if max_rows >= R else (max_rows // 8) * 8
        per_n_bytes = tile_r * row_bytes
        tile_n = max(1, min(N, block_budget // per_n_bytes))
        tile_n, tile_r = _ensure_two_grid_steps(tile_n, tile_r, N, R, 8)
        grid = (pl.cdiv(N, tile_n), pl.cdiv(R, tile_r))
        in_spec = pl.BlockSpec((tile_n, C, tile_r, 128), lambda n, s: (n, 0, s, 0))
        out_spec = pl.BlockSpec((tile_n, 1, tile_r, 128), lambda n, s: (n, 0, s, 0))
        out_struct = jax.ShapeDtypeStruct((N, 1, R, 128), dtype)
    else:
        # ---- 3-D fallback for non-128-aligned spatial sizes ------------------
        f = feature.reshape(N, C, S)
        a = anchor.reshape(N, C, S)
        elem_bytes = C * itemsize
        max_s = max(128, block_budget // elem_bytes)
        tile_s = S if max_s >= S else (max_s // 128) * 128
        per_n_bytes = tile_s * elem_bytes
        tile_n = max(1, min(N, block_budget // per_n_bytes))
        tile_n, tile_s = _ensure_two_grid_steps(tile_n, tile_s, N, S, 128)
        grid = (pl.cdiv(N, tile_n), pl.cdiv(S, tile_s))
        in_spec = pl.BlockSpec((tile_n, C, tile_s), lambda n, s: (n, 0, s))
        out_spec = pl.BlockSpec((tile_n, 1, tile_s), lambda n, s: (n, 0, s))
        out_struct = jax.ShapeDtypeStruct((N, 1, S), dtype)

    cost = pl.CostEstimate(
        flops=6 * N * C * S + 5 * N * S,
        transcendentals=2 * N * S,
        bytes_accessed=2 * N * C * S * itemsize + N * S * itemsize,
    )

    out = pl.pallas_call(
        _group_op_kernel,
        out_shape=out_struct,
        grid_spec=pltpu.PrefetchScalarGridSpec(
            num_scalar_prefetch=0,
            grid=grid,
            in_specs=[in_spec, in_spec],
            out_specs=out_spec,
        ),
        compiler_params=pltpu.CompilerParams(
            dimension_semantics=("parallel", "parallel"),
            vmem_limit_bytes=_VMEM_LIMIT_BYTES,
        ),
        cost_estimate=cost,
    )(f, a)

    return out.reshape(N, 1, H, W)


def group_op_ref(feature, anchor):
    """Pure-JAX reference mirroring the PyTorch forward."""
    f = feature.astype(jnp.float32)
    a = anchor.astype(jnp.float32)
    fn = f / jnp.maximum(jnp.linalg.norm(f, axis=1, keepdims=True), _EPS)
    an = a / jnp.maximum(jnp.linalg.norm(a, axis=1, keepdims=True), _EPS)
    return jnp.maximum(jnp.sum(fn * an, axis=1, keepdims=True), 0.0).astype(
        feature.dtype)


if __name__ == "__main__":
    key = jax.random.PRNGKey(0)
    kf, ka = jax.random.split(key)
    N, C, H, W = 2, 4, 16, 16
    feature = jax.random.normal(kf, (N, C, H, W), dtype=jnp.float32)
    anchor = jax.random.normal(ka, (N, C, H, W), dtype=jnp.float32)

    out = jax.block_until_ready(group_op(feature, anchor))
    ref = group_op_ref(feature, anchor)

    assert out.shape == (N, 1, H, W), out.shape
    assert jnp.allclose(out, ref, atol=1e-5, rtol=1e-5), "mismatch vs reference"
    print("KERNEL_OK")
</pallas_src>

<mosaic_0001>
module attributes {stable_mosaic.version = 11 : i64} {
  func.func @_group_op_kernel(%arg0: i32, %arg1: i32, %arg2: memref<1x4x2x128xf32, #tpu.memory_space<vmem>>, %arg3: memref<1x4x2x128xf32, #tpu.memory_space<vmem>>, %arg4: memref<1x1x2x128xf32, #tpu.memory_space<vmem>>) attributes {dimension_semantics = [#tpu.dimension_semantics<parallel>, #tpu.dimension_semantics<parallel>], iteration_bounds = array<i64: 2, 1>, scalar_prefetch = 0 : i64, scratch_operands = 0 : i64, tpu.core_type = #tpu.core_type<tc>, window_params = [{transform_indices = @transform_0, window_bounds = array<i64: 1, 4, 2, 128>}, {transform_indices = @transform_1, window_bounds = array<i64: 1, 4, 2, 128>}, {transform_indices = @transform_2, window_bounds = array<i64: 1, 1, 2, 128>}]} {
    %c0 = arith.constant 0 : index
    %c0_0 = arith.constant 0 : index
    %c0_1 = arith.constant 0 : index
    %c0_2 = arith.constant 0 : index
    %0 = vector.load %arg2[%c0, %c0_0, %c0_1, %c0_2] : memref<1x4x2x128xf32, #tpu.memory_space<vmem>>, vector<1x4x2x128xf32>
    %c0_3 = arith.constant 0 : index
    %c0_4 = arith.constant 0 : index
    %c0_5 = arith.constant 0 : index
    %c0_6 = arith.constant 0 : index
    %1 = vector.load %arg3[%c0_3, %c0_4, %c0_5, %c0_6] : memref<1x4x2x128xf32, #tpu.memory_space<vmem>>, vector<1x4x2x128xf32>
    %2 = arith.mulf %0, %1 : vector<1x4x2x128xf32>
    %cst = arith.constant dense<0.000000e+00> : vector<1x2x128xf32>
    %3 = vector.multi_reduction <add>, %2, %cst [1] : vector<1x4x2x128xf32> to vector<1x2x128xf32>
    %4 = vector.shape_cast %3 : vector<1x2x128xf32> to vector<1x1x2x128xf32>
    %5 = arith.mulf %0, %0 : vector<1x4x2x128xf32>
    %cst_7 = arith.constant dense<0.000000e+00> : vector<1x2x128xf32>
    %6 = vector.multi_reduction <add>, %5, %cst_7 [1] : vector<1x4x2x128xf32> to vector<1x2x128xf32>
    %7 = vector.shape_cast %6 : vector<1x2x128xf32> to vector<1x1x2x128xf32>
    %8 = arith.mulf %1, %1 : vector<1x4x2x128xf32>
    %cst_8 = arith.constant dense<0.000000e+00> : vector<1x2x128xf32>
    %9 = vector.multi_reduction <add>, %8, %cst_8 [1] : vector<1x4x2x128xf32> to vector<1x2x128xf32>
    %10 = vector.shape_cast %9 : vector<1x2x128xf32> to vector<1x1x2x128xf32>
    %11 = math.sqrt %7 : vector<1x1x2x128xf32>
    %cst_9 = arith.constant 9.99999996E-13 : f32
    %12 = vector.broadcast %cst_9 : f32 to vector<1x1x2x128xf32>
    %13 = arith.maximumf %11, %12 : vector<1x1x2x128xf32>
    %14 = math.sqrt %10 : vector<1x1x2x128xf32>
    %cst_10 = arith.constant 9.99999996E-13 : f32
    %15 = vector.broadcast %cst_10 : f32 to vector<1x1x2x128xf32>
    %16 = arith.maximumf %14, %15 : vector<1x1x2x128xf32>
    %17 = arith.mulf %13, %16 : vector<1x1x2x128xf32>
    %18 = arith.divf %4, %17 : vector<1x1x2x128xf32>
    %cst_11 = arith.constant 0.000000e+00 : f32
    %19 = vector.broadcast %cst_11 : f32 to vector<1x1x2x128xf32>
    %20 = arith.maximumf %18, %19 : vector<1x1x2x128xf32>
    %c0_12 = arith.constant 0 : index
    %c0_13 = arith.constant 0 : index
    %c0_14 = arith.constant 0 : index
    %c0_15 = arith.constant 0 : index
    %21 = vector.load %arg4[%c0_12, %c0_13, %c0_14, %c0_15] : memref<1x1x2x128xf32, #tpu.memory_space<vmem>>, vector<1x1x2x128xf32>
    tpu.vector_store %arg4[%c0_12, %c0_13, %c0_14, %c0_15], %20 {strides = array<i32>} : memref<1x1x2x128xf32, #tpu.memory_space<vmem>>, vector<1x1x2x128xf32>,
    return
  }
  func.func @transform_0(%arg0: i32, %arg1: i32) -> (i32, i32, i32, i32) {
    %c0_i32 = arith.constant 0 : i32
    %c0_i32_0 = arith.constant 0 : i32
    %c0_i32_1 = arith.constant 0 : i32
    return %arg0, %c0_i32, %arg1, %c0_i32_0 : i32, i32, i32, i32
  }
  func.func @transform_1(%arg0: i32, %arg1: i32) -> (i32, i32, i32, i32) {
    %c0_i32 = arith.constant 0 : i32
    %c0_i32_0 = arith.constant 0 : i32
    %c0_i32_1 = arith.constant 0 : i32
    return %arg0, %c0_i32, %arg1, %c0_i32_0 : i32, i32, i32, i32
  }
  func.func @transform_2(%arg0: i32, %arg1: i32) -> (i32, i32, i32, i32) {
    %c0_i32 = arith.constant 0 : i32
    %c0_i32_0 = arith.constant 0 : i32
    %c0_i32_1 = arith.constant 0 : i32
    return %arg0, %c0_i32, %arg1, %c0_i32_0 : i32, i32, i32, i32
  }
}

</mosaic_0001>

<bundles_post_ra>
// kernel: tpu_custom_call.1
= control target key start
LH: loop header
LB: loop body
LE: loop exit
PB: predicated region body
PF: predicated region fallthrough
CT: control target
= control target key end

     0   :  { %7 = vsyncpa [#allocation3], 0  ;;  %s854_s0 = inlined_call_operand.hbm [shape: f32[2,4,2,128], index: 0, kind: input, shape index: {}]   ;;  %s855_s1 = inlined_call_operand.hbm [shape: f32[2,4,2,128], index: 1, kind: input, shape index: {}]   ;;  %s856_s2 = inlined_call_operand.hbm [shape: f32[2,1,2,128], index: 2, kind: output, shape index: {}]  }
   0x1   :  { %9 = vsyncpa [#allocation3 + $0x1], 0 }
   0x2   :  { %10 = vsyncpa [#allocation6], 0 }
   0x3   :  { %12 = vsyncpa [#allocation6 + $0x1], 0 }
   0x4   :  { %13 = vsyncpa [#allocation4], 0 }
   0x5   :  { %15 = vsyncpa [#allocation4 + $0x1], 0  ;;  %s695_s9 = smov 0   ;;  %s697_s10 = smov 0  }
   0x6   :  { %s699_s11 = smov 0   ;;  %s701_s12 = smov 0  }
   0x7   :  { %s703_s13 = smov 0   ;;  %s705_s14 = smov 0  }
   0x8 LB: > { %s435_s15 = sadd.s32 4294967295, %s676_s14   ;;  %s436_s16 = sadd.s32 4294967294, %s676_s14   ;;  %s676_s14 = sphi %s705_s14, %s21_s14   ;;  %s672_s13 = sphi %s703_s13, %s866_s13   ;;  %s668_s12 = sphi %s701_s12, %s865_s12   ;;  %s664_s11 = sphi %s699_s11, %s864_s11   ;;  %s660_s10 = sphi %s697_s10, %s863_s10   ;;  %s656_s9 = sphi %s695_s9, %s862_s9  }
   0x9   : > { %s33_s17 = sadd.s32 1, %s672_s13  ;;  %s42_s18 = sadd.s32 1, %s664_s11 }
   0xa   : > { %p35_p0 = scmp.ge.s32.totalorder %s33_s17, 2  ;;  %p49_p1 = scmp.ne.s32.totalorder %s664_s11, %s660_s10 }
   0xb   : > { %p50_p2 = scmp.eq.s32.totalorder %s676_s14, 0  ;;  %p55_p3 = scmp.ne.s32.totalorder %s660_s10, %s656_s9 }
   0xc   : > { %s868_s17 = smov (%p35_p0, %s33_s17), 0  ;;  %p56_p5 = scmp.eq.s32.totalorder %s435_s15, 0 }
   0xd   : > { %p736_p4 = por %p50_p2, %p49_p1  ;;  %s37_s20 = ssub.s32 %s672_s13, %s868_s17 }
   0xe   : > { %p109_p6 = scmp.eq.s32.totalorder %s435_s15, 1  ;;  %p40_p7 = scmp.eq.s32.totalorder %s37_s20, 0 }
   0xf   : > { %p742_p8 = por %p56_p5, %p55_p3  ;;  %p115_p10 = scmp.eq.s32.totalorder %s436_s16, 1 }
  0x10   : > { %p746_p9 = por %p109_p6, %p49_p1  ;;  %p438_p12 = scmp.ge.s32.totalorder %s676_s14, 2 }
  0x11   : > { %s751_s23 = scalar_select %p40_p7, %s664_s11, %s42_s18  }
  0x12   : > { %p753_p11 = por %p115_p10, %p55_p3  ;;  %p472_p13 = scmp.lt.s32.totalorder %s676_s14, 2 }
  0x13   : > { %s760_s25 = sand.u32 1, %s664_s11   ;;  %s453_s27 = sshll.u32 %s672_s13, 3 }
  0x14   : > { %s439_s26 = sshll.u32 %s760_s25, 3  ;;  %s145_s30 = scalar_lea.hbm %s854_s0, %s453_s27 }
  0x15   : > { %s139_s3 = scalar_lea.vmem [#allocation2], %s439_s26  ;;  %s146_s5 = sshll.u32 %s145_s30, 4  ;;  %s147_s5 = int_to_ptr.hbm [resolvable:$true] %s146_s5 }
  0x16   : > { %s148_s4 = sshll.u32 %s139_s3, 4  ;;  %p769_p0 = pnand %p472_p13, %p736_p4  ;;  %s149_s4 = int_to_ptr.vmem [resolvable:$true] %s148_s4 }
  0x17   : > { %p445_p1 = scmp.ge.s32.totalorder %s676_s14, 1  ;;  %s136_s7 = scalar_lea.sflag [#allocation3], %s760_s25 }
  0x18   : > { %s678_s8 = smov 32   ;;  %s679_s15 = smov 2  }
  0x19   : > { %464 = dma.hbm_to_vmem [thread:$0]  (!%p769_p0), %s147_s5, 128, %s149_s4, %s136_s7, %s678_s8, %s678_s8, %s679_s15  }
  0x1a   : > { %p179_p2 = scmp.lt.s32.totalorder %s676_s14, 3  ;;  %s168_s20 = scalar_lea.hbm %s855_s1, %s453_s27 }
  0x1b   : > { %s169_s28 = sshll.u32 %s168_s20, 4  ;;  %s162_s19 = scalar_lea.vmem [#allocation5], %s439_s26  ;;  %s170_s28 = int_to_ptr.hbm [resolvable:$true] %s169_s28 }
  0x1c   : > { %p180_p3 = pnand %p445_p1, %p179_p2  ;;  %s171_s29 = sshll.u32 %s162_s19, 4  ;;  %s172_s29 = int_to_ptr.vmem [resolvable:$true] %s171_s29 }
  0x1d   : > { %s159_s30 = scalar_lea.sflag [#allocation6], %s760_s25  ;;  %s785_s3 = sand.u32 (!%p180_p3), 1, %s660_s10  }
  0x1e   : > { %467 = dma.hbm_to_vmem [thread:$0]  (!%p769_p0), %s170_s28, 128, %s172_s29, %s159_s30, %s678_s8, %s678_s8, %s679_s15  }
  0x1f   : > { %183 = sbr.rel (%p180_p3) target bundleno = 100 (0x64), region = 28  ;;  %s446_s4 = sshll.u32 (!%p180_p3), %s785_s3, 3 }
  0x20   : > { %s186_s5 = scalar_lea.sflag (!%p180_p3), [#allocation3], %s785_s3  ;;  %s189_s7 = scalar_lea.vmem (!%p180_p3), [#allocation2], %s446_s4 }
  0x24   : > { %643 = dma.done.wait (%p742_p8), %s186_s5, 128  }
  0x25   : > { %645 = vsyncadd (%p742_p8), %s186_s5, 4294967168  ;;  %s196_s25 = scalar_lea.sflag [#allocation6], %s785_s3  ;;  %s199_s26 = scalar_lea.vmem [#allocation5], %s446_s4 }
  0x26   : > { %647 = dma.done.wait (%p742_p8), %s196_s25, 128  }
  0x27   : > { %649 = vsyncadd (%p742_p8), %s196_s25, 4294967168  ;;  %vm238_vm0 = vcmask 1041408   ;;  %v226_v0 = vld [vmem:[%s189_s7] sm:$0x3]  ;;  %v227_v1 = vld [vmem:[%s189_s7 + $0x2] sm:$0x3] }
  0x28   : > { %v228_v2 = vld [vmem:[%s189_s7 + $0x4] sm:$0x3]  ;;  %v798_v3 = vld [vmem:[%s189_s7 + $0x6] sm:$0x3]  ;;  %v230_v4 = vld [vmem:[%s199_s26] sm:$0x3]  ;;  %v246_v5 = vmul.f32 %v226_v0, %v226_v0  ;;  %v247_v6 = vmul.f32 %v227_v1, %v227_v1 }
  0x29   : > { %v248_v7 = vmul.f32 %v228_v2, %v228_v2  ;;  %v231_v8 = vld [vmem:[%s199_s26 + $0x2] sm:$0x3]  ;;  %v249_v9 = vmul.f32 %v798_v3, %v798_v3  ;;  %v232_v10 = vld [vmem:[%s199_s26 + $0x4] sm:$0x3]  ;;  %v233_v11 = vld [vmem:[%s199_s26 + $0x6] sm:$0x3]  ;;  %v257_v14 = vmul.f32 %v230_v4, %v230_v4  ;;  %v234_v52 = vmul.f32 %v230_v4, %v226_v0 }
  0x2a   : > { %v250_v12 = vsel %vm238_vm0, %v246_v5, 0.0  ;;  %v251_v13 = vsel %vm238_vm0, %v247_v6, 0.0  ;;  %v258_v19 = vmul.f32 %v231_v8, %v231_v8  ;;  %v259_v20 = vmul.f32 %v232_v10, %v232_v10  ;;  %s448_s21 = sshll.u32 %s785_s3, 1  ;;  %s450_s27 = sshll.u32 %s668_s12, 1 }
  0x2b   : > { %v252_v15 = vadd.f32 %v251_v13, %v250_v12  ;;  %v253_v16 = vsel %vm238_vm0, %v248_v7, 0.0  ;;  %v255_v17 = vsel %vm238_vm0, %v249_v9, 0.0  ;;  %v260_v21 = vmul.f32 %v233_v11, %v233_v11  ;;  %s324_s15 = scalar_lea.hbm %s856_s2, %s450_s27  ;;  %s225_s16 = scalar_lea.vmem [#allocation7], %s448_s21 }
  0x2c   : > { %v261_v22 = vsel %vm238_vm0, %v257_v14, 0.0  ;;  %v262_v24 = vsel %vm238_vm0, %v258_v19, 0.0  ;;  %v264_v25 = vsel %vm238_vm0, %v259_v20, 0.0  ;;  %v235_v53 = vmul.f32 %v231_v8, %v227_v1  ;;  %s326_s18 = sshll.u32 %s225_s16, 4  ;;  %s328_s20 = sshll.u32 %s324_s15, 4  ;;  %s327_s18 = int_to_ptr.vmem [resolvable:$true] %s326_s18  ;;  %s329_s20 = int_to_ptr.hbm [resolvable:$true] %s328_s20 }
  0x2d   : > { %v254_v18 = vadd.f32 %v253_v16, %v252_v15  ;;  %v263_v26 = vadd.f32 %v262_v24, %v261_v22  ;;  %v266_v27 = vsel %vm238_vm0, %v260_v21, 0.0  ;;  %v236_v55 = vmul.f32 %v232_v10, %v228_v2  ;;  %s313_s12 = scalar_lea.sflag [#allocation4], %s785_s3  ;;  %s604_s28 = sshra.s32 %s329_s20, 4  ;;  %s605_s28 = int_to_ptr.hbm [resolvable:$true] %s604_s28 }
  0x2e   : > { %v239_v56 = vsel %vm238_vm0, %v234_v52, 0.0  ;;  %v240_v57 = vsel %vm238_vm0, %v235_v53, 0.0  ;;  %v237_v61 = vmul.f32 %v233_v11, %v798_v3  ;;  %s606_s19 = scalar_lea.hbm %s605_s28, 2  ;;  %s610_s4 = scalar_lea.hbm %s856_s2, 4 }
  0x2f   : > { %v256_v23 = vadd.f32 %v255_v17, %v254_v18  ;;  %v265_v28 = vadd.f32 %v264_v25, %v263_v26  ;;  %v241_v58 = vadd.f32 %v240_v57, %v239_v56  ;;  %v242_v59 = vsel %vm238_vm0, %v236_v55, 0.0  ;;  %p607_p4 = scmp.ne.s32.totalorder %s605_s28, %s606_s19  ;;  %p611_p7 = scmp.lt.s32.totalorder %s605_s28, %s856_s2 }
  0x30   : > { %v244_v2 = vsel %vm238_vm0, %v237_v61, 0.0  ;;  %p612_p8 = scmp.lt.s32.totalorder %s610_s4, %s606_s19 }
  0x31   : > { %524 = vrsqrt.f32 %v256_v23  ;;  %v267_v29 = vadd.f32 %v266_v27, %v265_v28  ;;  %vm275_vm1 = vcmp.eq.f32.partialorder %v256_v23, inf  ;;  %v278_v41 = vand.u32 2147483648, %v256_v23  ;;  %p608_p5 = pnand %p607_p4, %p746_p9 }
  0x32   : > { %vm277_vm2 = vcmp.eq.f32.partialorder %v256_v23, 0.0  ;;  %v243_v63 = vadd.f32 %v242_v59, %v241_v58  ;;  %p613_p10 = por %p612_p8, %p611_p7 }
  0x33   : > { %526 = vrsqrt.f32 %v267_v29  ;;  %vm288_vm3 = vcmp.eq.f32.partialorder %v267_v29, inf  ;;  %v291_v46 = vand.u32 2147483648, %v267_v29  ;;  %vm290_vm4 = vcmp.eq.f32.partialorder %v267_v29, 0.0  ;;  %p609_p6 = pneg %p608_p5 }
  0x34   : > { %v245_v7 = vadd.f32 %v244_v2, %v243_v63 }
  0x35   : > { %p614_p13 = pnand %p613_p10, %p609_p6 }
  0x37   : > { %v525_v30 = vpop.eup %524 }
  0x38   : > { %v269_v31 = vmul.f32 %v525_v30, %v256_v23 }
  0x39   : > { %v527_v33 = vpop.eup %526 }
  0x3a   : > { %v270_v32 = vmul.f32 %v525_v30, %v269_v31  ;;  %v282_v35 = vmul.f32 %v527_v33, %v267_v29 }
  0x3c   : > { %v271_v34 = vmul.f32 0.5, %v270_v32  ;;  %v283_v37 = vmul.f32 %v527_v33, %v282_v35 }
  0x3e   : > { %v272_v36 = vsub.f32 1.5, %v271_v34  ;;  %v284_v39 = vmul.f32 0.5, %v283_v37 }
  0x40   : > { %v273_v38 = vmul.f32 %v525_v30, %v272_v36  ;;  %v285_v42 = vsub.f32 1.5, %v284_v39 }
  0x42   : > { %v274_v40 = vmul.f32 %v273_v38, %v256_v23  ;;  %v286_v44 = vmul.f32 %v527_v33, %v285_v42 }
  0x44   : > { %v276_v43 = vsel %vm275_vm1, %v256_v23, %v274_v40  ;;  %v287_v47 = vmul.f32 %v286_v44, %v267_v29 }
  0x45   : > { %v279_v45 = vsel %vm277_vm2, %v278_v41, %v276_v43 }
  0x46   : > { %v280_v48 = vmax.f32 %v279_v45, 1e-12  ;;  %v289_v49 = vsel %vm288_vm3, %v267_v29, %v287_v47 }
  0x47   : > { %v292_v50 = vsel %vm290_vm4, %v291_v46, %v289_v49 }
  0x48   : > { %v293_v51 = vmax.f32 %v292_v50, 1e-12 }
  0x4a   : > { %v294_v54 = vmul.f32 %v293_v51, %v280_v48 }
  0x4c   : > { %528 = vrcp.f32 %v294_v54  ;;  %v306_v5 = vand.u32 2147483648, %v294_v54  ;;  %vm300_vm5 = vweird.f32 %v294_v54  ;;  %v304_v1 = vand.u32 2147483647, %v294_v54 }
  0x4e   : > { %v307_v6 = vor.u32 1.1754944e-38, %v306_v5  ;;  %vm305_vm8 = vcmp.eq.f32.partialorder %v304_v1, 8.507059e+37 }
  0x52   : > { %v529_v60 = vpop.eup %528 }
  0x53   : > { %v296_v62 = vmul.f32 %v529_v60, %v294_v54  ;;  %vm301_vm6 = vweird.f32 %v529_v60 }
  0x54   : > { %vm302_vm7 = vmor %vm300_vm5, %vm301_vm6 }
  0x55   : > { %v297_v0 = vsub.f32 1.0, %v296_v62 }
  0x57   : > { %v298_v4 = vmul.f32 %v529_v60, %v297_v0 }
  0x59   : > { %v299_v8 = vadd.f32 %v529_v60, %v298_v4 }
  0x5b   : > { %v303_v3 = vsel %vm302_vm7, %v529_v60, %v299_v8 }
  0x5c   : > { %v308_v9 = vsel %vm305_vm8, %v307_v6, %v303_v3 }
  0x5d   : > { %v309_v10 = vmul.f32 %v308_v9, %v245_v7 }
  0x5f   : > { %v310_v11 = vmax.f32 %v309_v10, 0.0 }
  0x61   : > { %311 = vst [vmem:[%s225_s16] sm:$0x3] %v310_v11 }
  0x62   : > { %617 = shalt.err (!%p614_p13)
}
  0x63   : > { %459 = dma.vmem_to_hbm [thread:$0]  (%p746_p9), %s327_s18, 32, %s329_s20, %s313_s12  }
  0x64 PF: > { %s340_s3 = sand.u32 1, %s656_s9   ;;  %p469_p0 = pnand %p438_p12, %p753_p11 }
  0x65   : > { %s341_s25 = scalar_lea.sflag [#allocation4], %s340_s3 }
  0x66   : > { %p470_p1 = pneg %p469_p0 }
  0x68   : > { %651 = dma.done.wait (%p470_p1), %s341_s25, 32  }
  0x69   : > { %653 = vsyncadd (%p470_p1), %s341_s25, 4294967264  ;;  %s21_s14 = sadd.s32 1, %s676_s14   ;;  %s862_s9 = smov %s660_s10 }
  0x6a   : > { %p18_p2 = scmp.ge.s32.totalorder %s21_s14, 4   ;;  %s863_s10 = smov %s664_s11 }
  0x6b   : > { %s864_s11 = smov %s751_s23  ;;  %s865_s12 = smov %s672_s13 }
  0x6c   : > { %s866_s13 = smov %s868_s17  ;;  %20 = sbr.rel (!%p18_p2) target bundleno = 8 (0x8), region = 86 }
  0x71   :  { %347 = vsyncpa [#allocation3], 1 }
  0x72   :  { %349 = vsyncpa [#allocation3 + $0x1], 1 }
  0x73   :  { %350 = vsyncpa [#allocation6], 1 }
  0x74   :  { %352 = vsyncpa [#allocation6 + $0x1], 1 }
  0x75   :  { %353 = vsyncpa [#allocation4], 1 }
  0x76   :  { %355 = vsyncpa [#allocation4 + $0x1], 1 }

</bundles_post_ra>
